<compile_context>
chip_gen: v7x
topology: tpu7x:2x2x1
jax: 0.10.0
libtpu: 0.0.40
codegen_flags: <defaults>
</compile_context>

<pallas_src>
import functools

import numpy as np
import jax
import jax.numpy as jnp
from jax import lax
from jax.experimental import pallas as pl
from jax.experimental.pallas import tpu as pltpu


def _round_up(x, m):
    return ((x + m - 1) // m) * m


def _cdiv(a, b):
    return -(-a // b)


def _tpu_info():
    """(num TensorCores per chip, per-core VMEM bytes) with conservative defaults."""
    n_tc, vmem_cap = 1, 64 << 20
    try:
        vmem_cap = int(pltpu.get_tpu_info().vmem_capacity_bytes)
    except Exception:
        pass
    try:
        kind = (jax.devices()[0].device_kind or "").lower()
        if "7" in kind:            # v7x: 2 TensorCores per chip, 64 MiB VMEM/TC
            n_tc = 2
    except Exception:
        pass
    return n_tc, vmem_cap


def make_tridiag_coeffs(N, tau, dtype=np.float64):
    """Exactly reproduces TriDiagonalLaplaceSolver.__init__ (LU pre-factorization)."""
    b = np.ones(N - 1, dtype=dtype) * (0 - tau * 1)
    a = np.ones(N, dtype=dtype) * (1 - tau * -2)
    c = np.ones(N - 1, dtype=dtype) * (0 - tau * 1)
    c[0] = 0 - tau * 1
    b[-1] = 0 - tau * 1
    a[0] = 1 + tau
    a[-1] = 1 + tau
    for i in range(N - 1):
        c[i] = c[i] / a[i]
        a[i + 1] = a[i + 1] - c[i] * b[i]
    return a, b, c


def make_tridiag_matrix(N, tau, dtype=np.float64):
    """The tridiagonal matrix A whose solve the module's Thomas recurrence performs."""
    A = np.zeros((N, N), dtype=dtype)
    idx = np.arange(N)
    A[idx, idx] = 1.0 + 2.0 * tau
    A[0, 0] = 1.0 + tau
    A[-1, -1] = 1.0 + tau
    A[idx[:-1], idx[1:]] = -tau
    A[idx[1:], idx[:-1]] = -tau
    return A


# --------------------------------------------------------------------------- #
# Kernels
# --------------------------------------------------------------------------- #
def _dense_matmul_kernel(x_ref, w_ref, o_ref):
    # x_ref: (TM, 128) batch rows; w_ref: (128, 128) block-diagonal A^{-1}^T (resident).
    o_ref[...] = jnp.dot(
        x_ref[...], w_ref[...], preferred_element_type=jnp.float32
    ).astype(o_ref.dtype)


def _thomas_recurrence(c_ref, b_ref, inv_a_ref, src, dst, N):
    """Forward-elimination / back-substitution on (N, SB, 128) refs.

    c/b/inv_a live in SMEM; each recurrence row is an (SB, 128) vreg-dense block.
    Works in-place when ``src is dst`` (fused-kernel scratch)."""
    sb = src.shape[1]
    if N <= 64 and N * sb <= 256:
        # Small tile: keep the whole forward pass in registers.
        y = [src[0]]
        for i in range(1, N):
            y.append(src[i] - y[-1] * c_ref[i - 1])
        z = y[N - 1] * inv_a_ref[N - 1]
        dst[N - 1] = z
        for i in range(N - 2, -1, -1):
            z = (y[i] - z * b_ref[i]) * inv_a_ref[i]
            dst[i] = z
    elif N <= 64:
        # Fully unrolled, register-carried recurrence; forward results staged in dst.
        prev = src[0]
        dst[0] = prev
        for i in range(1, N):
            prev = src[i] - prev * c_ref[i - 1]
            dst[i] = prev
        z = prev * inv_a_ref[N - 1]
        dst[N - 1] = z
        for i in range(N - 2, -1, -1):
            z = (dst[i] - z * b_ref[i]) * inv_a_ref[i]
            dst[i] = z
    else:
        # Large N: manually x8-unrolled chunks so the scheduler can hoist the
        # coefficient / staged-row loads ahead of the serial mul/sub chain
        # (review item: unroll the rolled Thomas loops).
        U = 8
        n_chunks = (N - 1) // U
        n_main = n_chunks * U

        prev = src[0]
        dst[0] = prev

        def fwd_chunk(t, prev):
            base = 1 + t * U
            for u in range(U):
                i = base + u
                prev = src[i] - prev * c_ref[i - 1]
                dst[i] = prev
            return prev

        prev = lax.fori_loop(0, n_chunks, fwd_chunk, prev)
        for i in range(1 + n_main, N):              # static remainder
            prev = src[i] - prev * c_ref[i - 1]
            dst[i] = prev

        z = prev * inv_a_ref[N - 1]
        dst[N - 1] = z

        def bwd_chunk(t, nxt):
            base = N - 2 - t * U
            for u in range(U):
                i = base - u
                nxt = (dst[i] - nxt * b_ref[i]) * inv_a_ref[i]
                dst[i] = nxt
            return nxt

        z = lax.fori_loop(0, n_chunks, bwd_chunk, z)
        for i in range(N - 2 - n_main, -1, -1):     # static remainder
            z = (dst[i] - z * b_ref[i]) * inv_a_ref[i]
            dst[i] = z


def _thomas_kernel(c_ref, b_ref, inv_a_ref, x_ref, o_ref, *, N):
    # Fallback variant: blocks already in the transposed (N, SB, 128) layout.
    _thomas_recurrence(c_ref, b_ref, inv_a_ref, x_ref, o_ref, N)


def _thomas_fused_kernel(c_ref, b_ref, inv_a_ref, x_ref, o_ref, xt_ref, *, N):
    # Fused variant: x_ref / o_ref are natural-layout (SB, 128, N) blocks and the
    # (SB,128,N)<->(N,SB,128) re-layout happens in-kernel (idle XLU) through a
    # VMEM scratch, removing two full HBM passes of XLA transposes.
    xt_ref[...] = jnp.transpose(x_ref[...], (2, 0, 1))
    _thomas_recurrence(c_ref, b_ref, inv_a_ref, xt_ref, xt_ref, N)
    o_ref[...] = jnp.transpose(xt_ref[...], (1, 2, 0))


# --------------------------------------------------------------------------- #
# Module port
# --------------------------------------------------------------------------- #
class TriDiagonalLaplaceSolver:
    """Pallas-TPU port of the PyTorch TriDiagonalLaplaceSolver forward pass."""

    MAX_DENSE_N = 128  # above this, use the Thomas recurrence kernel

    def __init__(self, N, tau):
        self.N = N
        a64, b64, c64 = make_tridiag_coeffs(N, tau)
        # Thomas-path coefficients: precompute 1/a so the serial back-substitution
        # chain multiplies instead of divides.
        self.c = jnp.asarray(c64, jnp.float32)
        self.b = jnp.asarray(b64, jnp.float32)
        self.inv_a = jnp.asarray(1.0 / a64, jnp.float32)

        self._n_tc, self._vmem_cap = _tpu_info()
        self._thomas_fused_ok = None    # None = untried, True/False after probe

        # Dense path: precompute T = A^{-1} in f64 on host, packed lane-dense.
        self.use_dense = N <= self.MAX_DENSE_N
        self.W = None
        self.Np = N
        self.pack = 1
        if self.use_dense:
            T = np.linalg.inv(make_tridiag_matrix(N, tau))
            Np = 1 << max(0, (N - 1).bit_length())   # next pow2 => divides 128
            r = 128 // Np
            # Block-diagonal W with r copies of T^T (zero-padded to Np x Np) so
            # the kernel's loads / MXU / stores are fully lane-dense (K = 128).
            W = np.zeros((128, 128), dtype=np.float64)
            for k in range(r):
                W[k * Np:k * Np + N, k * Np:k * Np + N] = T.T
            self.Np, self.pack = Np, r
            self.W = jnp.asarray(W, jnp.float32)

    def __call__(self, x):
        return self.solve(x)

    def solve(self, x, method="auto"):
        assert x.shape[-1] == self.N
        if method == "auto":
            method = "dense" if self.use_dense else "thomas"
        batch_dims = x.shape[:-1]
        B = int(np.prod(batch_dims)) if batch_dims else 1
        xf = x.reshape(B, self.N).astype(jnp.float32)
        if method == "dense":
            assert self.use_dense, "dense path only precomputed for small N"
            out = self._solve_dense(xf)
        else:
            out = self._solve_thomas(xf)
        return out.reshape(*batch_dims, self.N)

    # ------------------------------------------------------------------ #
    # Dense path: out = x @ T^T as one lane-dense MXU matmul per row tile.
    # ------------------------------------------------------------------ #
    def _solve_dense(self, xf, row_tile=2048):
        B, N = xf.shape
        Np, r = self.Np, self.pack          # r * Np == 128
        M = _cdiv(B, r)                     # packed rows of width 128
        M8 = _round_up(M, 8)
        tm = min(row_tile, M8)
        if self._n_tc >= 2 and M8 >= 512:
            # Only on 2-TC chips (v7x): keep >=2 grid steps so ("parallel",)
            # shards across both TensorCores, never shrinking below 256 rows.
            tm = min(tm, max(256, _round_up(_cdiv(M8, 2), 8)))
        steps = _cdiv(M8, tm)
        tm = _round_up(_cdiv(M8, steps), 8)  # even-out tiles -> minimal row padding
        m_pad = _round_up(M, tm)
        b_pad = m_pad * r
        if b_pad != B or Np != N:
            xf = jnp.pad(xf, ((0, b_pad - B), (0, Np - N)))
        xp = xf.reshape(m_pad, 128)          # contiguous reshape: free, lane-dense
        grid = (m_pad // tm,)
        cost = pl.CostEstimate(
            flops=2 * m_pad * 128 * 128,
            transcendentals=0,
            bytes_accessed=(2 * m_pad * 128 + 128 * 128) * 4,
        )
        out = pl.pallas_call(
            _dense_matmul_kernel,
            out_shape=jax.ShapeDtypeStruct((m_pad, 128), jnp.float32),
            grid=grid,
            in_specs=[
                pl.BlockSpec((tm, 128), lambda i: (i, 0)),
                pl.BlockSpec((128, 128), lambda i: (0, 0)),   # weights stay resident
            ],
            out_specs=pl.BlockSpec((tm, 128), lambda i: (i, 0)),
            compiler_params=pltpu.CompilerParams(
                dimension_semantics=("parallel",),
                vmem_limit_bytes=32 << 20),
            cost_estimate=cost,
        )(xp, self.W)
        out = out.reshape(b_pad, Np)
        if Np != N:
            out = out[:, :N]
        return out[:B]

    # ------------------------------------------------------------------ #
    # Thomas path: vectorized recurrence on an (N, SB, 128) vreg-dense layout.
    # ------------------------------------------------------------------ #
    def _thomas_tiling(self, N, g_needed):
        lane_n = _round_up(N, 128)
        # 2x double-buffered in + 2x out (natural layout, lane-padded) + scratch.
        per_sb = 4 * 128 * lane_n * 4 + N * 128 * 4
        budget = min(24 << 20, max(10 << 20, self._vmem_cap // 3))
        if 8 * per_sb > self._vmem_cap - (16 << 20):
            # TODO(synk): for very large N, split N across an 'arbitrary' grid
            # axis and carry the recurrence boundary row in SMEM/VMEM scratch.
            raise ValueError(
                f"TriDiagonalLaplaceSolver: N={N} too large for single-block "
                f"Thomas tiling on this TPU (VMEM {self._vmem_cap >> 20} MiB)")
        sb = max(8, min(64, (budget // per_sb) // 8 * 8))
        sb = min(sb, _round_up(g_needed, 8))
        if self._n_tc >= 2 and g_needed >= 16:
            # Keep >=2 grid steps so both v7x TensorCores get work.
            sb = min(sb, max(8, _round_up(_cdiv(g_needed, 2), 8)))
        if g_needed > sb:
            steps = _cdiv(g_needed, sb)
            sb = max(8, _round_up(_cdiv(g_needed, steps), 8))   # even-out tiles
        needed = sb * per_sb
        limit = max(32 << 20, int(needed * 2))
        limit = min(limit, max(self._vmem_cap - (8 << 20), 16 << 20))
        return sb, limit

    def _solve_thomas(self, xf):
        B, N = xf.shape
        g_needed = max(1, _cdiv(B, 128))
        sb, vmem_limit = self._thomas_tiling(N, g_needed)
        g = _round_up(g_needed, sb)
        b_pad = g * 128
        if b_pad != B:
            xf = jnp.pad(xf, ((0, b_pad - B), (0, 0)))
        x3 = xf.reshape(g, 128, N)           # free, order-preserving view
        grid = (g // sb,)

        if self._thomas_fused_ok is not False:
            try:
                out = self._thomas_call_fused(x3, N, g, sb, grid, vmem_limit)
                out = jax.block_until_ready(out)
                self._thomas_fused_ok = True
                return out.reshape(b_pad, N)[:B]
            except Exception:
                # Mosaic on this jax/libtpu could not lower the in-kernel
                # rank-3 re-layout; fall back to the XLA-transposed variant.
                self._thomas_fused_ok = False

        out = self._thomas_call_xla(x3, N, g, sb, grid, vmem_limit)
        out = jnp.transpose(out, (1, 2, 0)).reshape(b_pad, N)
        return out[:B]

    def _thomas_call_fused(self, x3, N, g, sb, grid, vmem_limit):
        b_pad = g * 128
        cost = pl.CostEstimate(flops=5 * b_pad * N, transcendentals=0,
                               bytes_accessed=2 * b_pad * N * 4)
        return pl.pallas_call(
            functools.partial(_thomas_fused_kernel, N=N),
            out_shape=jax.ShapeDtypeStruct((g, 128, N), jnp.float32),
            grid_spec=pltpu.PrefetchScalarGridSpec(
                num_scalar_prefetch=3,   # c, b, 1/a live in SMEM
                grid=grid,
                in_specs=[pl.BlockSpec((sb, 128, N),
                                       lambda j, c_s, b_s, ia_s: (j, 0, 0))],
                out_specs=pl.BlockSpec((sb, 128, N),
                                       lambda j, c_s, b_s, ia_s: (j, 0, 0)),
                scratch_shapes=[pltpu.VMEM((N, sb, 128), jnp.float32)]),
            compiler_params=pltpu.CompilerParams(
                dimension_semantics=("parallel",),
                vmem_limit_bytes=vmem_limit),
            cost_estimate=cost,
        )(self.c, self.b, self.inv_a, x3)

    def _thomas_call_xla(self, x3, N, g, sb, grid, vmem_limit):
        b_pad = g * 128
        # One extra HBM pass each way vs the fused kernel (fallback only).
        xt = jnp.transpose(x3, (2, 0, 1))    # (N, g, 128)
        cost = pl.CostEstimate(flops=5 * b_pad * N, transcendentals=0,
                               bytes_accessed=2 * b_pad * N * 4)
        return pl.pallas_call(
            functools.partial(_thomas_kernel, N=N),
            out_shape=jax.ShapeDtypeStruct((N, g, 128), jnp.float32),
            grid_spec=pltpu.PrefetchScalarGridSpec(
                num_scalar_prefetch=3,
                grid=grid,
                in_specs=[pl.BlockSpec((N, sb, 128),
                                       lambda j, c_s, b_s, ia_s: (0, j, 0))],
                out_specs=pl.BlockSpec((N, sb, 128),
                                       lambda j, c_s, b_s, ia_s: (0, j, 0))),
            compiler_params=pltpu.CompilerParams(
                dimension_semantics=("parallel",),
                vmem_limit_bytes=vmem_limit),
            cost_estimate=cost,
        )(self.c, self.b, self.inv_a, xt)


# --------------------------------------------------------------------------- #
if __name__ == "__main__":
    N = 16
    tau = 0.1
    solver = TriDiagonalLaplaceSolver(N, tau)

    key = jax.random.PRNGKey(0)
    x = jax.random.normal(key, (2, 4, 16, N), dtype=jnp.float32)

    # Default ("auto") path for N=16 is the dense MXU kernel; also exercise the
    # general-N Thomas kernel (fused re-layout, or fallback if it can't lower).
    out_dense = jax.block_until_ready(solver.solve(x, method="dense"))
    out_thomas = jax.block_until_ready(solver.solve(x, method="thomas"))

    # f64 numpy reference == the PyTorch module's solve().
    a64, b64, c64 = make_tridiag_coeffs(N, tau)
    ref = np.array(x, dtype=np.float64)
    for i in range(1, N):
        ref[..., i] = ref[..., i] - ref[..., i - 1] * c64[i - 1]
    ref[..., -1] = ref[..., -1] / a64[-1]
    for i in range(N - 2, -1, -1):
        ref[..., i] = (ref[..., i] - ref[..., i + 1] * b64[i]) / a64[i]

    np.testing.assert_allclose(np.asarray(out_dense), ref, rtol=5e-4, atol=5e-4)
    np.testing.assert_allclose(np.asarray(out_thomas), ref, rtol=1e-4, atol=1e-5)
    print("KERNEL_OK")
</pallas_src>

<mosaic_0001>
module attributes {stable_mosaic.version = 11 : i64} {
  func.func @_dense_matmul_kernel(%arg0: i32, %arg1: memref<16x128xf32, #tpu.memory_space<vmem>>, %arg2: memref<128x128xf32, #tpu.memory_space<vmem>>, %arg3: memref<16x128xf32, #tpu.memory_space<vmem>>) attributes {dimension_semantics = [#tpu.dimension_semantics<parallel>], iteration_bounds = array<i64: 1>, scalar_prefetch = 0 : i64, scratch_operands = 0 : i64, tpu.core_type = #tpu.core_type<tc>, window_params = [{transform_indices = @transform_0, window_bounds = array<i64: 16, 128>}, {pipeline_mode = #tpu.pipeline_mode<synchronous>, transform_indices = @transform_1, window_bounds = array<i64: 128, 128>}, {transform_indices = @transform_2, window_bounds = array<i64: 16, 128>}]} {
    %c0 = arith.constant 0 : index
    %c0_0 = arith.constant 0 : index
    %0 = vector.load %arg1[%c0, %c0_0] : memref<16x128xf32, #tpu.memory_space<vmem>>, vector<16x128xf32>
    %c0_1 = arith.constant 0 : index
    %c0_2 = arith.constant 0 : index
    %1 = vector.load %arg2[%c0_1, %c0_2] : memref<128x128xf32, #tpu.memory_space<vmem>>, vector<128x128xf32>
    %cst = arith.constant dense<0.000000e+00> : vector<16x128xf32>
    %2 = tpu.matmul %0, %1, %cst {dimension_numbers = #tpu.dot_dimension_numbers<[1], [0], [0], [1], [0, 0, 1, 1], [], []>} : vector<16x128xf32>, vector<128x128xf32>, vector<16x128xf32> -> vector<16x128xf32>
    %c0_3 = arith.constant 0 : index
    %c0_4 = arith.constant 0 : index
    %3 = vector.load %arg3[%c0_3, %c0_4] : memref<16x128xf32, #tpu.memory_space<vmem>>, vector<16x128xf32>
    tpu.vector_store %arg3[%c0_3, %c0_4], %2 {strides = array<i32>} : memref<16x128xf32, #tpu.memory_space<vmem>>, vector<16x128xf32>,
    return
  }
  func.func @transform_0(%arg0: i32) -> (i32, i32) {
    %c0_i32 = arith.constant 0 : i32
    %c0_i32_0 = arith.constant 0 : i32
    return %arg0, %c0_i32 : i32, i32
  }
  func.func @transform_1(%arg0: i32) -> (i32, i32) {
    %c0_i32 = arith.constant 0 : i32
    %c0_i32_0 = arith.constant 0 : i32
    %c0_i32_1 = arith.constant 0 : i32
    return %c0_i32, %c0_i32_0 : i32, i32
  }
  func.func @transform_2(%arg0: i32) -> (i32, i32) {
    %c0_i32 = arith.constant 0 : i32
    %c0_i32_0 = arith.constant 0 : i32
    return %arg0, %c0_i32 : i32, i32
  }
}

</mosaic_0001>

<bundles_post_ra>
// kernel: tpu_custom_call.1
= control target key start
LH: loop header
LB: loop body
LE: loop exit
PB: predicated region body
PF: predicated region fallthrough
CT: control target
= control target key end

     0   :  { %7 = vsyncpa [#allocation3], 0  ;;  %s380_s0 = inlined_call_operand.hbm [shape: f32[16,128], index: 0, kind: input, shape index: {}]   ;;  %s381_s1 = inlined_call_operand.hbm [shape: f32[128,128], index: 1, kind: input, shape index: {}]   ;;  %s382_s2 = inlined_call_operand.hbm [shape: f32[16,128], index: 2, kind: output, shape index: {}]  }
   0x1   :  { %8 = vsyncpa [#allocation6], 0 }
   0x2   :  { %9 = vsyncpa [#allocation4], 0  ;;  %s315_s9 = smov [#allocation2]   ;;  %s243_s13 = scalar_lea.hbm %s380_s0, 256 }
   0x3   :  { %s15_s10 = sshll.u32 %s315_s9, 4  ;;  %p244_p0 = scmp.ne.s32.totalorder %s380_s0, %s243_s13  ;;  %s16_s10 = int_to_ptr.vmem [resolvable:$true] %s15_s10 }
   0x4   :  { %p247_p1 = scmp.lt.u32.totalorder %s243_s13, %s380_s0 }
   0x6   :  { %p249_p2 = pnand %p247_p1, %p244_p0 }
   0x8   :  { %252 = shalt.err (!%p249_p2)
}
   0x9   :  { %s253_s18 = scalar_lea.vmem %s16_s10, 256  ;;  %p258_p4 = scmp.lt.s32.totalorder %s16_s10, %s16_s10 }
   0xa   :  { %p254_p3 = scmp.ne.s32.totalorder %s16_s10, %s253_s18  ;;  %p259_p5 = scmp.lt.s32.totalorder %s253_s18, %s253_s18 }
   0xc   :  { %p260_p6 = por %p259_p5, %p258_p4 }
   0xe   :  { %p261_p7 = pnand %p260_p6, %p254_p3 }
  0x10   :  { %264 = shalt.err (!%p261_p7)
}
  0x11   :  { %s316_s19 = smov 128   ;;  %s317_s20 = smov 8  }
  0x12   :  { %21 = dma.hbm_to_vmem [thread:$0]  %s380_s0, 256, %s16_s10, [#allocation3], %s316_s19, %s316_s19, %s317_s20  }
  0x13   :  { %s318_s23 = smov [#allocation5]   ;;  %s265_s27 = scalar_lea.hbm %s381_s1, 2048 }
  0x14   :  { %s27_s24 = sshll.u32 %s318_s23, 4  ;;  %p266_p8 = scmp.ne.s32.totalorder %s381_s1, %s265_s27  ;;  %s28_s24 = int_to_ptr.vmem [resolvable:$true] %s27_s24 }
  0x15   :  { %p269_p9 = scmp.lt.u32.totalorder %s265_s27, %s381_s1 }
  0x17   :  { %p271_p10 = pnand %p269_p9, %p266_p8 }
  0x19   :  { %274 = shalt.err (!%p271_p10)
}
  0x1a   :  { %s275_s4 = scalar_lea.vmem %s28_s24, 2048  ;;  %p280_p12 = scmp.lt.s32.totalorder %s28_s24, %s28_s24 }
  0x1b   :  { %p276_p11 = scmp.ne.s32.totalorder %s28_s24, %s275_s4  ;;  %p281_p13 = scmp.lt.s32.totalorder %s275_s4, %s275_s4 }
  0x1d   :  { %p282_p0 = por %p281_p13, %p280_p12 }
  0x1f   :  { %p283_p1 = pnand %p282_p0, %p276_p11 }
  0x21   :  { %286 = shalt.err (!%p283_p1)
}
  0x22   :  { %33 = dma.hbm_to_vmem [thread:$0]  %s381_s1, 2048, %s28_s24, [#allocation6], %s316_s19, %s316_s19, %s317_s20  }
  0x23   :  { %309 = dma.done.wait [#allocation3], 256  }
  0x24   :  { %310 = vsyncadd [#allocation3], 4294967040 }
  0x25   :  { %311 = dma.done.wait [#allocation6], 2048  }
  0x26   :  { %312 = vsyncadd [#allocation6], 4294965248  ;;  %v42_v0 = vld [vmem:[#allocation5] sm:$0xff]  ;;  %v43_v1 = vld [vmem:[#allocation5 + $0x8] sm:$0xff]  ;;  %s319_s1 = smov [#allocation7]  }
  0x27   :  { %v44_v2 = vld [vmem:[#allocation5 + $0x10] sm:$0xff]  ;;  %v206_v3 = vpack.c.bf16 %v43_v1, %v42_v0  ;;  %v45_v4 = vld [vmem:[#allocation5 + $0x18] sm:$0xff]  ;;  %v46_v6 = vld [vmem:[#allocation5 + $0x20] sm:$0xff]  ;;  %s140_s6 = sshll.u32 %s319_s1, 4  ;;  %s141_s6 = int_to_ptr.vmem [resolvable:$true] %s140_s6 }
  0x28   :  { %v210_v5 = vpack.c.bf16 %v45_v4, %v44_v2  ;;  %v47_v7 = vld [vmem:[#allocation5 + $0x28] sm:$0xff]  ;;  %v40_v9 = vld [vmem:[#allocation2] sm:$0xff]  ;;  %v49_v11 = vld [vmem:[#allocation5 + $0x38] sm:$0xff]  ;;  %s287_s7 = scalar_lea.vmem %s141_s6, 256  ;;  %p292_p3 = scmp.lt.s32.totalorder %s141_s6, %s141_s6 }
  0x29   :  { %207 = vmatprep.subr.bf16.mxu0 %v206_v3  ;;  %v214_v8 = vpack.c.bf16 %v47_v7, %v46_v6  ;;  %v48_v10 = vld [vmem:[#allocation5 + $0x30] sm:$0xff]  ;;  %203 = vmatprep.mubr.f32.mxu0 %v40_v9  ;;  %v50_v13 = vld [vmem:[#allocation5 + $0x40] sm:$0xff]  ;;  %v51_v14 = vld [vmem:[#allocation5 + $0x48] sm:$0xff]  ;;  %p288_p2 = scmp.ne.s32.totalorder %s141_s6, %s287_s7  ;;  %p293_p4 = scmp.lt.s32.totalorder %s287_s7, %s287_s7 }
  0x2a   :  { %209 = vmatpush3.bf16.msra.mxu0 %v206_v3  ;;  %v218_v12 = vpack.c.bf16 %v49_v11, %v48_v10  ;;  %v222_v15 = vpack.c.bf16 %v51_v14, %v50_v13  ;;  %v52_v16 = vld [vmem:[#allocation5 + $0x50] sm:$0xff]  ;;  %v53_v17 = vld [vmem:[#allocation5 + $0x58] sm:$0xff]  ;;  %v54_v19 = vld [vmem:[#allocation5 + $0x60] sm:$0xff] }
  0x2b   :  { %211 = vmatprep.subr.bf16.mxu0 %v210_v5  ;;  %v226_v18 = vpack.c.bf16 %v53_v17, %v52_v16  ;;  %v55_v20 = vld [vmem:[#allocation5 + $0x68] sm:$0xff]  ;;  %v56_v22 = vld [vmem:[#allocation5 + $0x70] sm:$0xff]  ;;  %v57_v23 = vld [vmem:[#allocation5 + $0x78] sm:$0xff]  ;;  %p294_p5 = por %p293_p4, %p292_p3 }
  0x2c   :  { %v230_v21 = vpack.c.bf16 %v55_v20, %v54_v19  ;;  %v234_v24 = vpack.c.bf16 %v57_v23, %v56_v22  ;;  %v41_v25 = vld [vmem:[#allocation2 + $0x8] sm:$0xff] }
  0x2d   :  { %p295_p6 = pnand %p294_p5, %p288_p2 }
  0x2e   :  { %213 = vmatpush3.bf16.msra.mxu0 %v210_v5 }
  0x2f   :  { %215 = vmatprep.subr.bf16.mxu0 %v214_v8 }
  0x32   :  { %217 = vmatpush3.bf16.msra.mxu0 %v214_v8 }
  0x33   :  { %219 = vmatprep.subr.bf16.mxu0 %v218_v12 }
  0x36   :  { %221 = vmatpush3.bf16.msra.mxu0 %v218_v12 }
  0x37   :  { %223 = vmatprep.subr.bf16.mxu0 %v222_v15 }
  0x3a   :  { %225 = vmatpush3.bf16.msra.mxu0 %v222_v15 }
  0x3b   :  { %227 = vmatprep.subr.bf16.mxu0 %v226_v18 }
  0x3e   :  { %229 = vmatpush3.bf16.msra.mxu0 %v226_v18 }
  0x3f   :  { %231 = vmatprep.subr.bf16.mxu0 %v230_v21 }
  0x42   :  { %233 = vmatpush3.bf16.msra.mxu0 %v230_v21 }
  0x43   :  { %235 = vmatprep.subr.bf16.mxu0 %v234_v24 }
  0x46   :  { %237 = vmatpush3.bf16.msra.mxu0 %v234_v24 }
  0x49   :  { %204 = vmatmul.mubr.f32.vlgmr.msra.gmra.mrb[0].mxu0 %v41_v25 }
 0x11c   :  { %v205_v26 = vpop.f32.mrb[0].mxu0 }
 0x11d   :  { %134 = vst [vmem:[#allocation7 + $0x8] sm:$0xff] %v205_v26  ;;  %v124_v27 = vpop.f32.mrb[1].mxu0 }
 0x11e   :  { %133 = vst [vmem:[#allocation7] sm:$0xff] %v124_v27 }
 0x11f   :  { %298 = shalt.err (!%p295_p6)
}
 0x120   :  { %s299_s10 = scalar_lea.hbm %s382_s2, 256 }
 0x121   :  { %p300_p7 = scmp.ne.s32.totalorder %s382_s2, %s299_s10  ;;  %p303_p8 = scmp.lt.u32.totalorder %s299_s10, %s382_s2 }
 0x123   :  { %p305_p9 = pnand %p303_p8, %p300_p7 }
 0x125   :  { %308 = shalt.err (!%p305_p9)
}
 0x126   :  { %146 = dma.vmem_to_hbm [thread:$0]  %s141_s6, 256, %s382_s2, [#allocation4], %s316_s19, %s316_s19, %s317_s20  }
 0x127   :  { %313 = dma.done.wait [#allocation4], 256  }
 0x128   :  { %314 = vsyncadd [#allocation4], 4294967040 }
 0x129   :  { %150 = vsyncpa [#allocation3], 1 }
 0x12a   :  { %151 = vsyncpa [#allocation6], 1 }
 0x12b   :  { %152 = vsyncpa [#allocation4], 1 }

</bundles_post_ra>
